<compile_context>
chip_gen: v5e
topology: v5e:2x2
jax: 0.10.0
libtpu: 0.0.40
codegen_flags: <defaults>
</compile_context>

<pallas_src>
import functools

import jax
import jax.numpy as jnp
import numpy as np
from jax.experimental import pallas as pl
from jax.experimental.pallas import tpu as pltpu


def _relation_fusing_kernel(x_ref, u_ref, t_ref, ts_ref, e_ref, ei_ref, w_ref,
                            out_ref, *, num_relations: int, num_heads: int,
                            pack: int, negative_slope: float,
                            approx_recip: bool):
    # x_ref:   (TN, k*R*D)      packed node features (compute dtype)
    # u_ref:   (k*R*D, k*R*H)   block-diag score projection (f32)
    # t_ref:   (k*H,  k*R*H)    (pack,head) -> (pack,rel,head) broadcast (f32)
    # ts_ref:  (k*R*H, k*H)     (pack,rel,head) -> (pack,head) sum (f32)
    # e_ref:   (k*R*H, k*R*D)   attn -> Dn-lane broadcast (f32)
    # ei_ref:  (k*H,  k*R*D)    1/denom -> all-relation-lane broadcast (f32)
    # w_ref:   (k*R*D, k*D)     block-diag node transforms (compute dtype)
    # out_ref: (TN, k*D)        fused output (lane-dense)
    R, H, k = num_relations, num_heads, pack
    f32 = jnp.float32
    G = R * H

    xc = x_ref[...]                      # (TN, k*R*D), compute dtype
    xf = xc.astype(f32)

    # ---- attention logits for ALL relations / packed rows: one MXU matmul.
    s = jnp.dot(xf, u_ref[...], preferred_element_type=f32)    # (TN, k*R*H)
    s = jnp.where(s > 0, s, negative_slope * s)                 # leaky ReLU

    # ---- numerically stable softmax over relations per (packed row, head).
    maxes = []
    for c in range(k):
        m = s[:, c * G:c * G + H]
        for r in range(1, R):
            m = jnp.maximum(m, s[:, c * G + r * H:c * G + (r + 1) * H])
        maxes.append(m)
    m_cat = maxes[0] if k == 1 else jnp.concatenate(maxes, axis=-1)  # (TN,k*H)
    s_max = jnp.dot(m_cat, t_ref[...], preferred_element_type=f32)   # (TN,kRH)

    p = jnp.exp(s - s_max)                                           # 1 EUP pass
    denom = jnp.dot(p, ts_ref[...], preferred_element_type=f32)      # (TN,k*H)
    if approx_recip:
        inv = pl.reciprocal(denom, approx=True)                      # EUP slot
    else:
        inv = 1.0 / denom

    # ---- broadcast attention numerator / denominator onto feature lanes.
    attn_num = jnp.dot(p, e_ref[...], preferred_element_type=f32)    # (TN,kRD)
    attn_den = jnp.dot(inv, ei_ref[...], preferred_element_type=f32)  # (TN,kRD)

    # ---- attention-weighted projection; the relation sum happens inside
    # this single block-diagonal MXU contraction.
    x_scaled = (xf * attn_num * attn_den).astype(w_ref.dtype)
    out = jnp.dot(x_scaled, w_ref[...], preferred_element_type=f32)  # (TN,k*D)
    out_ref[...] = out.astype(out_ref.dtype)


def _block_diag(m, k):
    """k-fold block-diagonal replication of a 2-D matrix."""
    if k == 1:
        return m
    a, b = m.shape
    eye_k = jnp.eye(k, dtype=m.dtype)
    return jnp.einsum('cd,ab->cadb', eye_k, m).reshape(k * a, k * b)


def relation_fusing(node_feats, rel_embs, node_ws, rel_ws, *,
                    num_heads: int, node_hidden_dim: int,
                    relation_hidden_dim: int, negative_slope: float = 0.2,
                    tile_n: int = 512, compute_dtype=jnp.bfloat16,
                    approx_reciprocal: bool = True):
    """JAX/Pallas equivalent of RelationFusing.forward (dropout p=0.0)."""
    R = len(node_feats)
    if R == 1:
        return node_feats[0]

    H, Dn, Dr = num_heads, node_hidden_dim, relation_hidden_dim
    # The PyTorch forward reshapes the (Dr, Dr) relation weights to (Dr, Dn);
    # that is only well defined when Dr == Dn.  Fail loudly otherwise.
    assert Dr == Dn, "RelationFusing forward implies relation_hidden_dim == node_hidden_dim"
    D = H * Dn
    N = node_feats[0].shape[0]
    out_dtype = node_feats[0].dtype
    f32 = jnp.float32
    cdt = jnp.dtype(compute_dtype) if compute_dtype is not None else jnp.dtype(out_dtype)

    # ------ grid-invariant parameter algebra (hoisted out of the kernel) ----
    rel = jnp.stack(rel_embs, 0).reshape(R, H, Dr).astype(f32)
    w = jnp.stack(node_ws, 0).reshape(R, H, Dn, Dn).astype(f32)
    rw = jnp.stack(rel_ws, 0).reshape(R, H, Dr, Dn).astype(f32)

    eye_h = jnp.eye(H, dtype=f32)
    eye_r = jnp.eye(R, dtype=f32)

    relp = jnp.einsum('rhc,rhcd->rhd', rel, rw)                 # rel' (R,H,Dn)
    u = jnp.einsum('rhij,rhj->rhi', w, relp)                    # (R,H,Dn)

    # Per-relation block-diag (over heads) node transform, stacked over r.
    w_stack = jnp.einsum('hg,rhij->rhigj', eye_h, w).reshape(R * D, D)
    # Score projection, block-diag over relations: (R*D, R*H).
    u_blk = jnp.einsum('hg,rhi->rhig', eye_h, u).reshape(R, D, H)
    u_bd = jnp.einsum('rq,rih->riqh', eye_r, u_blk).reshape(R * D, R * H)
    # Head -> Dn-lane broadcast matrices.
    e_blk = jnp.repeat(eye_h, Dn, axis=1)                       # (H, D)
    e_bd = jnp.einsum('rq,hd->rhqd', eye_r, e_blk).reshape(R * H, R * D)
    einv_bd = jnp.tile(e_blk, (1, R))                           # (H, R*D)
    t_bd = jnp.tile(eye_h, (1, R))                              # (H, R*H)

    # ------ lane packing: put k = 128 // D node rows on one lane row --------
    k = 128 // D if (D < 128 and 128 % D == 0) else 1
    # TODO(synk): for D > 128 the dense block-diagonal W still wastes HBM/MXU
    # by (D/Dn)x; a per-128-lane-chunk weight layout would avoid that.

    u_pk = _block_diag(u_bd, k)                                 # (kRD, kRH)
    e_pk = _block_diag(e_bd, k)                                 # (kRH, kRD)
    einv_pk = _block_diag(einv_bd, k)                           # (kH,  kRD)
    t_pk = _block_diag(t_bd, k)                                 # (kH,  kRH)
    ts_pk = t_pk.T                                              # (kRH, kH)
    w_pk = _block_diag(w_stack, k).astype(cdt)                  # (kRD, kD)

    # ------ node tiling (lane-dense, >= 2 grid steps when possible) ---------
    sub = 8 if cdt.itemsize >= 4 else (16 if cdt.itemsize == 2 else 32)
    rows = -(-N // k)
    tn = min(int(tile_n), rows)
    if rows > sub:                       # >= 2 grid steps -> both v7x TCs work
        tn = min(tn, -(-rows // 2))
    tn = max(sub, -(-tn // sub) * sub)
    rows_pad = -(-rows // tn) * tn
    n_pad = rows_pad * k
    grid = (rows_pad // tn,)

    x_cat = jnp.concatenate([f.reshape(N, D) for f in node_feats], axis=-1)
    x_cat = x_cat.astype(cdt)
    if n_pad != N:
        x_cat = jnp.pad(x_cat, ((0, n_pad - N), (0, 0)))
    x_pk = x_cat.reshape(rows_pad, k * R * D)

    kernel = functools.partial(
        _relation_fusing_kernel, num_relations=R, num_heads=H, pack=k,
        negative_slope=float(negative_slope),
        approx_recip=bool(approx_reciprocal))

    const_bytes = sum(int(np.prod(a.shape)) * a.dtype.itemsize
                      for a in (u_pk, t_pk, ts_pk, e_pk, einv_pk, w_pk))
    x_blk_bytes = tn * k * R * D * cdt.itemsize
    out_blk_bytes = tn * k * D * jnp.dtype(out_dtype).itemsize
    needed = 2 * (x_blk_bytes + out_blk_bytes + const_bytes) + (4 << 20)
    vmem_limit = int(min(64 << 20, max(32 << 20, needed)))

    kRD, kRH, kH, kD = k * R * D, k * R * H, k * H, k * D
    per_row = (kRD * kRH + 2 * kH * kRH + kRH * kRD + kH * kRD + kRD * kD)
    cost = pl.CostEstimate(
        flops=int(2 * rows_pad * per_row),
        transcendentals=int(rows_pad * kH * (R + 1)),
        bytes_accessed=int(x_pk.size * cdt.itemsize
                           + n_pad * D * jnp.dtype(out_dtype).itemsize
                           + const_bytes),
    )

    out = pl.pallas_call(
        kernel,
        out_shape=jax.ShapeDtypeStruct((rows_pad, kD), out_dtype),
        grid_spec=pltpu.PrefetchScalarGridSpec(
            num_scalar_prefetch=0,
            grid=grid,
            in_specs=[
                pl.BlockSpec((tn, kRD), lambda i: (i, 0)),
                # Grid-invariant blocks (constant index_map -> fetched once).
                pl.BlockSpec((kRD, kRH), lambda i: (0, 0)),
                pl.BlockSpec((kH, kRH), lambda i: (0, 0)),
                pl.BlockSpec((kRH, kH), lambda i: (0, 0)),
                pl.BlockSpec((kRH, kRD), lambda i: (0, 0)),
                pl.BlockSpec((kH, kRD), lambda i: (0, 0)),
                pl.BlockSpec((kRD, kD), lambda i: (0, 0)),
            ],
            out_specs=pl.BlockSpec((tn, kD), lambda i: (i, 0)),
        ),
        compiler_params=pltpu.CompilerParams(
            dimension_semantics=("parallel",),
            vmem_limit_bytes=vmem_limit),
        cost_estimate=cost,
    )(x_pk, u_pk, t_pk, ts_pk, e_pk, einv_pk, w_pk)

    out = out.reshape(rows_pad * k, D)
    if rows_pad * k != N:
        out = out[:N]
    return out


def relation_fusing_reference(node_feats, rel_embs, node_ws, rel_ws, *,
                              num_heads, node_hidden_dim, relation_hidden_dim,
                              negative_slope=0.2):
    """Pure-JAX reference mirroring the PyTorch forward exactly."""
    R = len(node_feats)
    if R == 1:
        return node_feats[0]
    H, Dn, Dr = num_heads, node_hidden_dim, relation_hidden_dim
    x = jnp.stack(node_feats, 0).reshape(R, -1, H, Dn)
    rel = jnp.stack(rel_embs, 0).reshape(R, H, Dr)
    w = jnp.stack(node_ws, 0).reshape(R, H, Dn, Dn)
    rw = jnp.stack(rel_ws, 0).reshape(R, H, Dr, Dn)
    x = jnp.einsum('abcd,acde->abce', x, w)
    rel = jnp.einsum('abc,abcd->abd', rel, rw)
    scores = (x * rel[:, None]).sum(-1, keepdims=True)
    scores = jax.nn.softmax(jax.nn.leaky_relu(scores, negative_slope), axis=0)
    fused = (x * scores).sum(0)
    return fused.reshape(-1, H * Dn)


if __name__ == "__main__":
    # Small, deterministic configuration.
    R = 3                    # number of relations (length of the input lists)
    N = 64                   # number of destination nodes
    H = 4                    # num_heads
    Dn = 16                  # node_hidden_dim
    Dr = 16                  # relation_hidden_dim (forward implies Dr == Dn)
    neg_slope = 0.2

    key = jax.random.PRNGKey(0)
    keys = jax.random.split(key, 4 * R)

    node_feats = [jax.random.normal(keys[i], (N, H * Dn), jnp.float32)
                  for i in range(R)]
    rel_embs = [jax.random.normal(keys[R + i], (H * Dr,), jnp.float32)
                for i in range(R)]
    node_ws = [0.1 * jax.random.normal(keys[2 * R + i], (H, Dn, Dn), jnp.float32)
               for i in range(R)]
    rel_ws = [0.1 * jax.random.normal(keys[3 * R + i], (H, Dr, Dr), jnp.float32)
              for i in range(R)]

    ref = relation_fusing_reference(node_feats, rel_embs, node_ws, rel_ws,
                                    num_heads=H, node_hidden_dim=Dn,
                                    relation_hidden_dim=Dr,
                                    negative_slope=neg_slope)
    ref = jax.block_until_ready(ref)

    # Exact path: f32 storage + exact reciprocal (tight-ish tolerance).
    out_f32 = relation_fusing(node_feats, rel_embs, node_ws, rel_ws,
                              num_heads=H, node_hidden_dim=Dn,
                              relation_hidden_dim=Dr, negative_slope=neg_slope,
                              compute_dtype=jnp.float32,
                              approx_reciprocal=False)
    out_f32 = jax.block_until_ready(out_f32)
    assert out_f32.shape == (N, H * Dn)
    np.testing.assert_allclose(np.asarray(out_f32), np.asarray(ref),
                               rtol=1e-3, atol=1e-4)

    # Default fast path: bf16 x storage + EUP approx reciprocal (loose tol).
    out_fast = relation_fusing(node_feats, rel_embs, node_ws, rel_ws,
                               num_heads=H, node_hidden_dim=Dn,
                               relation_hidden_dim=Dr,
                               negative_slope=neg_slope)
    out_fast = jax.block_until_ready(out_fast)
    assert out_fast.shape == (N, H * Dn)
    np.testing.assert_allclose(np.asarray(out_fast), np.asarray(ref),
                               rtol=1e-1, atol=1e-1)

    # Ragged N (exercises row packing + padding), f32 exact path.
    N2 = 50
    nf2 = [f[:N2] for f in node_feats]
    ref2 = relation_fusing_reference(nf2, rel_embs, node_ws, rel_ws,
                                     num_heads=H, node_hidden_dim=Dn,
                                     relation_hidden_dim=Dr,
                                     negative_slope=neg_slope)
    out2 = relation_fusing(nf2, rel_embs, node_ws, rel_ws,
                           num_heads=H, node_hidden_dim=Dn,
                           relation_hidden_dim=Dr, negative_slope=neg_slope,
                           compute_dtype=jnp.float32, approx_reciprocal=False)
    out2 = jax.block_until_ready(out2)
    np.testing.assert_allclose(np.asarray(out2), np.asarray(ref2),
                               rtol=1e-3, atol=1e-4)

    print("KERNEL_OK")
</pallas_src>

<mosaic_0001>
module attributes {stable_mosaic.version = 11 : i64} {
  func.func @_relation_fusing_kernel(%arg0: i32, %arg1: memref<16x384xf32, #tpu.memory_space<vmem>>, %arg2: memref<384x24xf32, #tpu.memory_space<vmem>>, %arg3: memref<8x24xf32, #tpu.memory_space<vmem>>, %arg4: memref<24x8xf32, #tpu.memory_space<vmem>>, %arg5: memref<24x384xf32, #tpu.memory_space<vmem>>, %arg6: memref<8x384xf32, #tpu.memory_space<vmem>>, %arg7: memref<384x128xf32, #tpu.memory_space<vmem>>, %arg8: memref<16x128xf32, #tpu.memory_space<vmem>>) attributes {dimension_semantics = [#tpu.dimension_semantics<parallel>], iteration_bounds = array<i64: 2>, scalar_prefetch = 0 : i64, scratch_operands = 0 : i64, tpu.core_type = #tpu.core_type<tc>, window_params = [{transform_indices = @transform_0, window_bounds = array<i64: 16, 384>}, {pipeline_mode = #tpu.pipeline_mode<synchronous>, transform_indices = @transform_1, window_bounds = array<i64: 384, 24>}, {pipeline_mode = #tpu.pipeline_mode<synchronous>, transform_indices = @transform_2, window_bounds = array<i64: 8, 24>}, {pipeline_mode = #tpu.pipeline_mode<synchronous>, transform_indices = @transform_3, window_bounds = array<i64: 24, 8>}, {pipeline_mode = #tpu.pipeline_mode<synchronous>, transform_indices = @transform_4, window_bounds = array<i64: 24, 384>}, {pipeline_mode = #tpu.pipeline_mode<synchronous>, transform_indices = @transform_5, window_bounds = array<i64: 8, 384>}, {pipeline_mode = #tpu.pipeline_mode<synchronous>, transform_indices = @transform_6, window_bounds = array<i64: 384, 128>}, {transform_indices = @transform_7, window_bounds = array<i64: 16, 128>}]} {
    %c0 = arith.constant 0 : index
    %c0_0 = arith.constant 0 : index
    %0 = vector.load %arg1[%c0, %c0_0] : memref<16x384xf32, #tpu.memory_space<vmem>>, vector<16x384xf32>
    %c0_1 = arith.constant 0 : index
    %c0_2 = arith.constant 0 : index
    %1 = vector.load %arg2[%c0_1, %c0_2] : memref<384x24xf32, #tpu.memory_space<vmem>>, vector<384x24xf32>
    %cst = arith.constant dense<0.000000e+00> : vector<16x24xf32>
    %2 = tpu.matmul %0, %1, %cst {dimension_numbers = #tpu.dot_dimension_numbers<[1], [0], [0], [1], [0, 0, 1, 1], [], []>} : vector<16x384xf32>, vector<384x24xf32>, vector<16x24xf32> -> vector<16x24xf32>
    %cst_3 = arith.constant 0.000000e+00 : f32
    %3 = vector.broadcast %cst_3 : f32 to vector<16x24xf32>
    %4 = arith.cmpf ogt, %2, %3 : vector<16x24xf32>
    %cst_4 = arith.constant 2.000000e-01 : f32
    %5 = vector.broadcast %cst_4 : f32 to vector<16x24xf32>
    %6 = arith.mulf %5, %2 : vector<16x24xf32>
    %7 = arith.select %4, %2, %6 : vector<16x24xi1>, vector<16x24xf32>
    %8 = vector.extract_strided_slice %7 {offsets = [0, 0], sizes = [16, 4], strides = [1, 1]} : vector<16x24xf32> to vector<16x4xf32>
    %9 = vector.extract_strided_slice %7 {offsets = [0, 4], sizes = [16, 4], strides = [1, 1]} : vector<16x24xf32> to vector<16x4xf32>
    %10 = arith.maximumf %8, %9 : vector<16x4xf32>
    %11 = vector.extract_strided_slice %7 {offsets = [0, 8], sizes = [16, 4], strides = [1, 1]} : vector<16x24xf32> to vector<16x4xf32>
    %12 = arith.maximumf %10, %11 : vector<16x4xf32>
    %13 = vector.extract_strided_slice %7 {offsets = [0, 12], sizes = [16, 4], strides = [1, 1]} : vector<16x24xf32> to vector<16x4xf32>
    %14 = vector.extract_strided_slice %7 {offsets = [0, 16], sizes = [16, 4], strides = [1, 1]} : vector<16x24xf32> to vector<16x4xf32>
    %15 = arith.maximumf %13, %14 : vector<16x4xf32>
    %16 = vector.extract_strided_slice %7 {offsets = [0, 20], sizes = [16, 4], strides = [1, 1]} : vector<16x24xf32> to vector<16x4xf32>
    %17 = arith.maximumf %15, %16 : vector<16x4xf32>
    %18 = tpu.concatenate %12, %17 in 1 : vector<16x4xf32>, vector<16x4xf32> -> vector<16x8xf32>
    %c0_5 = arith.constant 0 : index
    %c0_6 = arith.constant 0 : index
    %19 = vector.load %arg3[%c0_5, %c0_6] : memref<8x24xf32, #tpu.memory_space<vmem>>, vector<8x24xf32>
    %cst_7 = arith.constant dense<0.000000e+00> : vector<16x24xf32>
    %20 = tpu.matmul %18, %19, %cst_7 {dimension_numbers = #tpu.dot_dimension_numbers<[1], [0], [0], [1], [0, 0, 1, 1], [], []>} : vector<16x8xf32>, vector<8x24xf32>, vector<16x24xf32> -> vector<16x24xf32>
    %21 = arith.subf %7, %20 : vector<16x24xf32>
    %22 = math.exp %21 : vector<16x24xf32>
    %c0_8 = arith.constant 0 : index
    %c0_9 = arith.constant 0 : index
    %23 = vector.load %arg4[%c0_8, %c0_9] : memref<24x8xf32, #tpu.memory_space<vmem>>, vector<24x8xf32>
    %cst_10 = arith.constant dense<0.000000e+00> : vector<16x8xf32>
    %24 = tpu.matmul %22, %23, %cst_10 {dimension_numbers = #tpu.dot_dimension_numbers<[1], [0], [0], [1], [0, 0, 1, 1], [], []>} : vector<16x24xf32>, vector<24x8xf32>, vector<16x8xf32> -> vector<16x8xf32>
    %cst_11 = arith.constant 1.000000e+00 : f32
    %25 = vector.broadcast %cst_11 : f32 to vector<16x8xf32>
    %26 = arith.divf %25, %24 : vector<16x8xf32>
    %c0_12 = arith.constant 0 : index
    %c0_13 = arith.constant 0 : index
    %27 = vector.load %arg5[%c0_12, %c0_13] : memref<24x384xf32, #tpu.memory_space<vmem>>, vector<24x384xf32>
    %cst_14 = arith.constant dense<0.000000e+00> : vector<16x384xf32>
    %28 = tpu.matmul %22, %27, %cst_14 {dimension_numbers = #tpu.dot_dimension_numbers<[1], [0], [0], [1], [0, 0, 1, 1], [], []>} : vector<16x24xf32>, vector<24x384xf32>, vector<16x384xf32> -> vector<16x384xf32>
    %c0_15 = arith.constant 0 : index
    %c0_16 = arith.constant 0 : index
    %29 = vector.load %arg6[%c0_15, %c0_16] : memref<8x384xf32, #tpu.memory_space<vmem>>, vector<8x384xf32>
    %cst_17 = arith.constant dense<0.000000e+00> : vector<16x384xf32>
    %30 = tpu.matmul %26, %29, %cst_17 {dimension_numbers = #tpu.dot_dimension_numbers<[1], [0], [0], [1], [0, 0, 1, 1], [], []>} : vector<16x8xf32>, vector<8x384xf32>, vector<16x384xf32> -> vector<16x384xf32>
    %31 = arith.mulf %0, %28 : vector<16x384xf32>
    %32 = arith.mulf %31, %30 : vector<16x384xf32>
    %c0_18 = arith.constant 0 : index
    %c0_19 = arith.constant 0 : index
    %33 = vector.load %arg7[%c0_18, %c0_19] : memref<384x128xf32, #tpu.memory_space<vmem>>, vector<384x128xf32>
    %cst_20 = arith.constant dense<0.000000e+00> : vector<16x128xf32>
    %34 = tpu.matmul %32, %33, %cst_20 {dimension_numbers = #tpu.dot_dimension_numbers<[1], [0], [0], [1], [0, 0, 1, 1], [], []>} : vector<16x384xf32>, vector<384x128xf32>, vector<16x128xf32> -> vector<16x128xf32>
    %c0_21 = arith.constant 0 : index
    %c0_22 = arith.constant 0 : index
    %35 = vector.load %arg8[%c0_21, %c0_22] : memref<16x128xf32, #tpu.memory_space<vmem>>, vector<16x128xf32>
    tpu.vector_store %arg8[%c0_21, %c0_22], %34 {strides = array<i32>} : memref<16x128xf32, #tpu.memory_space<vmem>>, vector<16x128xf32>,
    return
  }
  func.func @transform_0(%arg0: i32) -> (i32, i32) {
    %c0_i32 = arith.constant 0 : i32
    %c0_i32_0 = arith.constant 0 : i32
    return %arg0, %c0_i32 : i32, i32
  }
  func.func @transform_1(%arg0: i32) -> (i32, i32) {
    %c0_i32 = arith.constant 0 : i32
    %c0_i32_0 = arith.constant 0 : i32
    %c0_i32_1 = arith.constant 0 : i32
    return %c0_i32, %c0_i32_0 : i32, i32
  }
  func.func @transform_2(%arg0: i32) -> (i32, i32) {
    %c0_i32 = arith.constant 0 : i32
    %c0_i32_0 = arith.constant 0 : i32
    %c0_i32_1 = arith.constant 0 : i32
    return %c0_i32, %c0_i32_0 : i32, i32
  }
  func.func @transform_3(%arg0: i32) -> (i32, i32) {
    %c0_i32 = arith.constant 0 : i32
    %c0_i32_0 = arith.constant 0 : i32
    %c0_i32_1 = arith.constant 0 : i32
    return %c0_i32, %c0_i32_0 : i32, i32
  }
  func.func @transform_4(%arg0: i32) -> (i32, i32) {
    %c0_i32 = arith.constant 0 : i32
    %c0_i32_0 = arith.constant 0 : i32
    %c0_i32_1 = arith.constant 0 : i32
    return %c0_i32, %c0_i32_0 : i32, i32
  }
  func.func @transform_5(%arg0: i32) -> (i32, i32) {
    %c0_i32 = arith.constant 0 : i32
    %c0_i32_0 = arith.constant 0 : i32
    %c0_i32_1 = arith.constant 0 : i32
    return %c0_i32, %c0_i32_0 : i32, i32
  }
  func.func @transform_6(%arg0: i32) -> (i32, i32) {
    %c0_i32 = arith.constant 0 : i32
    %c0_i32_0 = arith.constant 0 : i32
    %c0_i32_1 = arith.constant 0 : i32
    return %c0_i32, %c0_i32_0 : i32, i32
  }
  func.func @transform_7(%arg0: i32) -> (i32, i32) {
    %c0_i32 = arith.constant 0 : i32
    %c0_i32_0 = arith.constant 0 : i32
    return %arg0, %c0_i32 : i32, i32
  }
}

</mosaic_0001>

<bundles_post_ra>
// kernel: tpu_custom_call.1
= control target key start
LH: loop header
LB: loop body
LE: loop exit
PB: predicated region body
PF: predicated region fallthrough
CT: control target
= control target key end

     0   :  { %12 = vsyncpa [#allocation3], 0  ;;  %s1691_s0 = inlined_call_operand.vmem [shape: f32[32,384], index: 0, kind: input, shape index: {}]   ;;  %s1692_s1 = inlined_call_operand.vmem [shape: f32[384,24], index: 1, kind: input, shape index: {}]   ;;  %s1693_s2 = inlined_call_operand.vmem [shape: f32[8,24], index: 2, kind: input, shape index: {}]   ;;  %s1694_s3 = inlined_call_operand.vmem [shape: f32[24,8], index: 3, kind: input, shape index: {}]   ;;  %s1695_s4 = inlined_call_operand.hbm [shape: f32[24,384], index: 4, kind: input, shape index: {}]   ;;  %s1696_s5 = inlined_call_operand.hbm [shape: f32[8,384], index: 5, kind: input, shape index: {}]   ;;  %s1697_s6 = inlined_call_operand.vmem [shape: f32[384,128], index: 6, kind: input, shape index: {}]   ;;  %s1698_s7 = inlined_call_operand.hbm [shape: f32[32,128], index: 7, kind: output, shape index: {}]  }
   0x1   :  { %13 = vsyncpa [#allocation6], 0 }
   0x2   :  { %14 = vsyncpa [#allocation4], 0 }
   0x3   :  { %16 = vsyncpa [#allocation4 + $0x1], 0  ;;  %s1249_s24 = smov 0   ;;  %s1251_s25 = smov 0  }
   0x4   :  { %s1253_s26 = smov 0   ;;  %s1255_s27 = smov 0  }
   0x5 LB: > { %s1270_s28 = sadd.s32 4294967295, %s1199_s27   ;;  %s960_s29 = sadd.s32 4294967294, %s1199_s27   ;;  %s1199_s27 = sphi %s1255_s27, %s1705_s27   ;;  %s1195_s26 = sphi %s1253_s26, %s1704_s26   ;;  %s1191_s25 = sphi %s1251_s25, %s1703_s25   ;;  %s1187_s24 = sphi %s1249_s24, %s1702_s24  }
   0x6   : > { %s1274_s30 = sadd.s32 1, %s1199_s27   ;;  %s181_s8 = sadd.s32 1, %s1195_s26 }
   0x7   : > { %s178_s9 = ssub.s32 %s1199_s27, %s1274_s30  ;;  %p191_p0 = scmp.ne.s32.totalorder %s1195_s26, %s1191_s25 }
   0x8   : > { %p179_p1 = scmp.eq.s32.totalorder %s178_s9, 0  ;;  %p192_p2 = scmp.eq.s32.totalorder %s1270_s28, 1 }
   0x9   : > { %p197_p3 = scmp.ne.s32.totalorder %s1191_s25, %s1187_s24  ;;  %p198_p4 = scmp.eq.s32.totalorder %s960_s29, 1 }
   0xa   : > { %s1285_s10 = scalar_select %p179_p1, %s1195_s26, %s181_s8  }
   0xb   : > { %p1287_p5 = por %p192_p2, %p191_p0  ;;  %p1291_p6 = por %p198_p4, %p197_p3 }
   0xc   : > { %p961_p7 = scmp.ge.s32.totalorder %s1199_s27, 1  ;;  %p205_p8 = scmp.lt.s32.totalorder %s1199_s27, 3 }
   0xd   : > { %p1016_p9 = scmp.eq.s32.totalorder %s1270_s28, 0  ;;  %s225_s16 = sshll.u32 %s1695_s4, 4  ;;  %s226_s16 = int_to_ptr.hbm [resolvable:$true] %s225_s16 }
   0xe   : > { %p1298_p10 = pnand %p961_p7, %p205_p8  ;;  %s1201_s17 = smov [#allocation2]  }
   0xf   : > { %s227_s18 = sshll.u32 %s1201_s17, 4  ;;  %s240_s21 = sshll.u32 %s1696_s5, 4  ;;  %s228_s18 = int_to_ptr.vmem [resolvable:$true] %s227_s18  ;;  %s241_s21 = int_to_ptr.hbm [resolvable:$true] %s240_s21 }
  0x10   : > { %p1005_p11 = pneg %p1298_p10  ;;  %s1202_s22 = smov 384  }
  0x11   : > { %s1203_s23 = smov 24   ;;  %s1204_s29 = smov [#allocation5]  }
  0x12   : > { %p1006_p12 = pnand %p1016_p9, %p1005_p11  ;;  %s242_s8 = sshll.u32 %s1204_s29, 4  ;;  %s243_s8 = int_to_ptr.vmem [resolvable:$true] %s242_s8 }
  0x13   : > { %268 = sbr.rel (%p1298_p10) target bundleno = 981 (0x3d5), region = 48 }
  0x14   : > { %1008 = dma.hbm_to_vmem [thread:$0]  (!%p1006_p12), %s226_s16, 1152, %s228_s18, [#allocation3], %s1202_s22, %s1202_s22, %s1203_s23  }
  0x15   : > { %1011 = dma.hbm_to_vmem [thread:$0]  (!%p1006_p12), %s241_s21, 384, %s243_s8, [#allocation6]  }
  0x18   : > { %1174 = dma.done.wait (%p1016_p9), [#allocation3], 1152  }
  0x19   : > { %1176 = vsyncadd (%p1016_p9), [#allocation3], 4294966144 }
  0x1a   : > { %1178 = dma.done.wait (%p1016_p9), [#allocation6], 384  }
  0x1b   : > { %1180 = vsyncadd (%p1016_p9), [#allocation6], 4294966912  ;;  %v368_v0 = vld [vmem:[%s1692_s1 + $0x178] sm:$0xff]  ;;  %v367_v1 = vld [vmem:[%s1692_s1 + $0x170] sm:$0xff]  ;;  %s969_s9 = sshll.u32 %s1270_s28, 1  ;;  %s1205_s17 = smov 120  }
  0x1c   : > { %v336_v2 = vld [vmem:[%s1692_s1 + $0x78] sm:$0xff]  ;;  %415 = vmatpush.msra.mxu2 %v368_v0  ;;  %v335_v4 = vld [vmem:[%s1692_s1 + $0x70] sm:$0xff]  ;;  %v366_v5 = vld [vmem:[%s1692_s1 + $0x168] sm:$0xff]  ;;  %p308_p13 = scmp.lt.s32.totalorder %s969_s9, 3  ;;  %s1206_s18 = smov 124   ;;  %vm470_vm2 = vcmask 31744  }
  0x1d   : > { %369 = vmatpush.msra.mxu0 %v336_v2  ;;  %v352_v3 = vld [vmem:[%s1692_s1 + $0xf8] sm:$0xff]  ;;  %v351_v6 = vld [vmem:[%s1692_s1 + $0xf0] sm:$0xff]  ;;  %v334_v7 = vld [vmem:[%s1692_s1 + $0x68] sm:$0xff]  ;;  %vm474_vm3 = vcmask 64512   ;;  %vm513_vm4 = vcmask 195584   ;;  %s304_s14 = sand.u32 1, %s1191_s25  }
  0x1e   : > { %392 = vmatpush.msra.mxu1 %v352_v3  ;;  %416 = vmatpush.msra.mxu2 %v367_v1  ;;  %v350_v8 = vld [vmem:[%s1692_s1 + $0xe8] sm:$0xff]  ;;  %v365_v9 = vld [vmem:[%s1692_s1 + $0x160] sm:$0xff]  ;;  %v364_v12 = vld [vmem:[%s1692_s1 + $0x158] sm:$0xff]  ;;  %s1707_s9 = smov (!%p308_p13, %s969_s9), 3  ;;  %s968_s15 = sshll.u32 %s304_s14, 4 }
  0x1f   : > { %370 = vmatpush.msra.mxu0 %v335_v4  ;;  %v333_v10 = vld [vmem:[%s1692_s1 + $0x60] sm:$0xff]  ;;  %v332_v13 = vld [vmem:[%s1692_s1 + $0x58] sm:$0xff]  ;;  %v363_v15 = vld [vmem:[%s1692_s1 + $0x150] sm:$0xff]  ;;  %s994_s21 = smul.u32 24, %s1707_s9  ;;  %s306_s16 = scalar_lea.vmem [#allocation7], %s968_s15 }
  0x20   : > { %393 = vmatpush.msra.mxu1 %v351_v6  ;;  %417 = vmatpush.msra.mxu2 %v366_v5  ;;  %v349_v11 = vld [vmem:[%s1692_s1 + $0xe0] sm:$0xff]  ;;  %v348_v14 = vld [vmem:[%s1692_s1 + $0xd8] sm:$0xff]  ;;  %v331_v16 = vld [vmem:[%s1692_s1 + $0x50] sm:$0xff]  ;;  %s992_s13 = sshll.u32 %s1270_s28, 4  ;;  %s1149_s8 = scalar_lea.hbm %s1698_s7, 32 }
  0x21   : > { %371 = vmatpush.msra.mxu0 %v334_v7  ;;  %v347_v17 = vld [vmem:[%s1692_s1 + $0xd0] sm:$0xff]  ;;  %v362_v18 = vld [vmem:[%s1692_s1 + $0x148] sm:$0xff]  ;;  %v361_v21 = vld [vmem:[%s1692_s1 + $0x140] sm:$0xff]  ;;  %s312_s20 = scalar_lea.vmem %s1691_s0, %s994_s21 }
  0x22   : > { %394 = vmatpush.msra.mxu1 %v350_v8  ;;  %418 = vmatpush.msra.mxu2 %v365_v9  ;;  %v330_v19 = vld [vmem:[%s1692_s1 + $0x48] sm:$0xff]  ;;  %v329_v22 = vld [vmem:[%s1692_s1 + $0x40] sm:$0xff]  ;;  %v360_v24 = vld [vmem:[%s1692_s1 + $0x138] sm:$0xff] }
  0x23   : > { %372 = vmatpush.msra.mxu0 %v333_v10  ;;  %v346_v20 = vld [vmem:[%s1692_s1 + $0xc8] sm:$0xff]  ;;  %v345_v23 = vld [vmem:[%s1692_s1 + $0xc0] sm:$0xff]  ;;  %v328_v25 = vld [vmem:[%s1692_s1 + $0x38] sm:$0xff] }
  0x24   : > { %395 = vmatpush.msra.mxu1 %v349_v11  ;;  %419 = vmatpush.msra.mxu2 %v364_v12  ;;  %v344_v26 = vld [vmem:[%s1692_s1 + $0xb8] sm:$0xff]  ;;  %v359_v27 = vld [vmem:[%s1692_s1 + $0x130] sm:$0xff]  ;;  %v358_v30 = vld [vmem:[%s1692_s1 + $0x128] sm:$0xff] }
  0x25   : > { %373 = vmatpush.msra.mxu0 %v332_v13  ;;  %v327_v28 = vld [vmem:[%s1692_s1 + $0x30] sm:$0xff]  ;;  %v326_v31 = vld [vmem:[%s1692_s1 + $0x28] sm:$0xff]  ;;  %v357_v33 = vld [vmem:[%s1692_s1 + $0x120] sm:$0xff] }
  0x26   : > { %396 = vmatpush.msra.mxu1 %v348_v14  ;;  %420 = vmatpush.msra.mxu2 %v363_v15  ;;  %v343_v29 = vld [vmem:[%s1692_s1 + $0xb0] sm:$0xff]  ;;  %v342_v32 = vld [vmem:[%s1692_s1 + $0xa8] sm:$0xff]  ;;  %v325_v34 = vld [vmem:[%s1692_s1 + $0x20] sm:$0xff] }
  0x27   : > { %374 = vmatpush.msra.mxu0 %v331_v16  ;;  %v341_v35 = vld [vmem:[%s1692_s1 + $0xa0] sm:$0xff]  ;;  %v356_v36 = vld [vmem:[%s1692_s1 + $0x118] sm:$0xff]  ;;  %v355_v39 = vld [vmem:[%s1692_s1 + $0x110] sm:$0xff] }
  0x28   : > { %397 = vmatpush.msra.mxu1 %v347_v17  ;;  %421 = vmatpush.msra.mxu2 %v362_v18  ;;  %v324_v37 = vld [vmem:[%s1692_s1 + $0x18] sm:$0xff]  ;;  %v323_v40 = vld [vmem:[%s1692_s1 + $0x10] sm:$0xff]  ;;  %v354_v42 = vld [vmem:[%s1692_s1 + $0x108] sm:$0xff] }
  0x29   : > { %375 = vmatpush.msra.mxu0 %v330_v19  ;;  %v340_v38 = vld [vmem:[%s1692_s1 + $0x98] sm:$0xff]  ;;  %v339_v41 = vld [vmem:[%s1692_s1 + $0x90] sm:$0xff]  ;;  %v322_v43 = vld [vmem:[%s1692_s1 + $0x8] sm:$0xff] }
  0x2a   : > { %398 = vmatpush.msra.mxu1 %v346_v20  ;;  %422 = vmatpush.msra.mxu2 %v361_v21  ;;  %v338_v44 = vld [vmem:[%s1692_s1 + $0x88] sm:$0xff]  ;;  %v353_v45 = vld [vmem:[%s1692_s1 + $0x100] sm:$0xff]  ;;  %v1467_v47 = vld [vmem:[%s312_s20 + $0x10] sm:$0xff] }
  0x2b   : > { %376 = vmatpush.msra.mxu0 %v329_v22  ;;  %v321_v46 = vld [vmem:[%s1692_s1] sm:$0xff]  ;;  %v1474_v50 = vld [vmem:[%s312_s20 + $0x8] sm:$0xff]  ;;  %v1481_v52 = vld [vmem:[%s312_s20 + $0x18] sm:$0xff] }
  0x2c   : > { %399 = vmatpush.msra.mxu1 %v345_v23  ;;  %423 = vmatpush.msra.mxu2 %v360_v24  ;;  %v337_v48 = vld [vmem:[%s1692_s1 + $0x80] sm:$0xff]  ;;  %v1479_v51 = vld [vmem:[%s312_s20 + $0x28] sm:$0xff]  ;;  %v512_v17 = vld [vmem:[%s1694_s3 + $0x10] sm:$0xff] }
  0x2d   : > { %377 = vmatpush.msra.mxu0 %v328_v25  ;;  %v1472_v49 = vld [vmem:[%s312_s20] sm:$0xff]  ;;  %v580_v18 = vld [vmem:[#allocation2 + $0x38] sm:$0xff]  ;;  %v511_v20 = vld [vmem:[%s1694_s3 + $0x8] sm:$0xff] }
  0x2e   : > { %400 = vmatpush.msra.mxu1 %v344_v26  ;;  %424 = vmatpush.msra.mxu2 %v359_v27  ;;  %v1483_v53 = vld [vmem:[%s312_s20 + $0x20] sm:$0xff]  ;;  %v578_v22 = vld [vmem:[#allocation2 + $0x28] sm:$0xff]  ;;  %v575_v25 = vld [vmem:[#allocation2 + $0x10] sm:$0xff]  ;;  %s861_s20 = scalar_lea.sflag [#allocation4], %s304_s14 }
  0x2f   : > { %378 = vmatpush.msra.mxu0 %v327_v28  ;;  %v473_v4 = vld [vmem:[%s1693_s2] sm:$0xff]  ;;  %v574_v24 = vld [vmem:[#allocation2 + $0x8] sm:$0xff]  ;;  %v579_v26 = vld [vmem:[#allocation2 + $0x30] sm:$0xff] }
  0x30   : > { %401 = vmatpush.msra.mxu1 %v343_v29  ;;  %425 = vmatpush.msra.mxu2 %v358_v30  ;;  %v581_v19 = vld [vmem:[#allocation2 + $0x40] sm:$0xff]  ;;  %v576_v27 = vld [vmem:[#allocation2 + $0x18] sm:$0xff] }
  0x31   : > { %379 = vmatpush.msra.mxu0 %v326_v31  ;;  %993 = vmatpush.msra.mxu3 %v473_v4  ;;  %v577_v21 = vld [vmem:[#allocation2 + $0x20] sm:$0xff] }
  0x32   : > { %402 = vmatpush.msra.mxu1 %v342_v32  ;;  %426 = vmatpush.msra.mxu2 %v357_v33  ;;  %v510_v23 = vld [vmem:[%s1694_s3] sm:$0xff] }
  0x33   : > { %380 = vmatpush.msra.mxu0 %v325_v34  ;;  %533 = vmatpush.msrb.mxu3 %v512_v17  ;;  %v573_v28 = vld [vmem:[#allocation2] sm:$0xff]  ;;  %v780_v17 = vld [vmem:[%s1697_s6 + $0x138] sm:$0xff] }
  0x34   : > { %403 = vmatpush.msra.mxu1 %v341_v35  ;;  %427 = vmatpush.msra.mxu2 %v356_v36 }
  0x35   : > { %381 = vmatpush.msra.mxu0 %v324_v37  ;;  %534 = vmatpush.msrb.mxu3 %v511_v20  ;;  %v652_v37 = vld [vmem:[#allocation5 + $0x8] sm:$0xff]  ;;  %v764_v20 = vld [vmem:[%s1697_s6 + $0xb8] sm:$0xff] }
  0x36   : > { %404 = vmatpush.msra.mxu1 %v340_v38  ;;  %428 = vmatpush.msra.mxu2 %v355_v39  ;;  %v651_v38 = vld [vmem:[#allocation5] sm:$0xff]  ;;  %v653_v39 = vld [vmem:[#allocation5 + $0x10] sm:$0xff] }
  0x37   : > { %382 = vmatpush.msra.mxu0 %v323_v40  ;;  %535 = vmatpush.msrb.mxu3 %v510_v23  ;;  %v763_v23 = vld [vmem:[%s1697_s6 + $0xb0] sm:$0xff] }
  0x38   : > { %405 = vmatpush.msra.mxu1 %v339_v41  ;;  %429 = vmatpush.msra.mxu2 %v354_v42  ;;  %v788_v41 = vld [vmem:[%s1697_s6 + $0x178] sm:$0xff]  ;;  %v787_v42 = vld [vmem:[%s1697_s6 + $0x170] sm:$0xff] }
  0x39   : > { %383 = vmatpush.msra.mxu0 %v322_v43  ;;  %v756_v43 = vld [vmem:[%s1697_s6 + $0x78] sm:$0xff] }
  0x3a   : > { %406 = vmatpush.msra.mxu1 %v338_v44  ;;  %430 = vmatpush.msra.mxu2 %v353_v45  ;;  %v772_v44 = vld [vmem:[%s1697_s6 + $0xf8] sm:$0xff]  ;;  %v786_v45 = vld [vmem:[%s1697_s6 + $0x168] sm:$0xff] }
  0x3b   : > { %384 = vmatpush.msra.mxu0 %v321_v46  ;;  %431 = vmatmul.f32.vlgmr.msra.gmra.mxu2 %v1467_v47  ;;  %v755_v46 = vld [vmem:[%s1697_s6 + $0x70] sm:$0xff] }
  0x3c   : > { %407 = vmatpush.msra.mxu1 %v337_v48  ;;  %385 = vmatmul.f32.vlgmr.msra.gmra.mxu0 %v1472_v49  ;;  %v771_v48 = vld [vmem:[%s1697_s6 + $0xf0] sm:$0xff] }
  0x3d   : > { %408 = vmatmul.f32.vlgmr.msra.gmra.mxu1 %v1474_v50  ;;  %496 = vmatpush.msrb.mxu0 %v473_v4 }
  0x3e   : > { %641 = vmatpush.msrb.mxu1 %v581_v19  ;;  %675 = vmatpush.msrb.mxu2 %v651_v38  ;;  %v748_v19 = vld [vmem:[%s1697_s6 + $0x38] sm:$0xff] }
  0x3f   : > { %618 = vmatpush.msra.mxu0 %v580_v18 }
  0x40   : > { %642 = vmatpush.msrb.mxu1 %v578_v22  ;;  %812 = vmatpush.msra.mxu2 %v772_v44  ;;  %v747_v22 = vld [vmem:[%s1697_s6 + $0x30] sm:$0xff]  ;;  %v760_v44 = vld [vmem:[%s1697_s6 + $0x98] sm:$0xff] }
  0x41   : > { %619 = vmatpush.msra.mxu0 %v577_v21  ;;  %v779_v21 = vld [vmem:[%s1697_s6 + $0x130] sm:$0xff] }
  0x42   : > { %643 = vmatpush.msrb.mxu1 %v575_v25  ;;  %813 = vmatpush.msra.mxu2 %v771_v48  ;;  %v759_v48 = vld [vmem:[%s1697_s6 + $0x90] sm:$0xff] }
  0x43   : > { %434 = vmatmul.f32.gmra.mxu2 %v1479_v51  ;;  %620 = vmatpush.msra.mxu0 %v574_v24  ;;  %v778_v24 = vld [vmem:[%s1697_s6 + $0x128] sm:$0xff] }
  0x44   : > { %388 = vmatmul.f32.gmra.mxu0 %v1481_v52  ;;  %789 = vmatpush.msra.mxu1 %v756_v43  ;;  %v744_v43 = vld [vmem:[%s1697_s6 + $0x18] sm:$0xff] }
  0x45   : > { %411 = vmatmul.f32.gmra.mxu1 %v1483_v53 }
  0x46   : > { %790 = vmatpush.msra.mxu1 %v755_v46  ;;  %v743_v46 = vld [vmem:[%s1697_s6 + $0x10] sm:$0xff] }
  0xb9   : > { %v386_v54 = vpop.f32.mrf.mxu0 }
  0xba   : > { %v409_v55 = vpop.f32.mrf.mxu1 }
  0xbb   : > { %v410_v56 = vadd.f32 %v409_v55, %v386_v54  ;;  %v754_v54 = vld [vmem:[%s1697_s6 + $0x68] sm:$0xff] }
  0xbc   : > { %v770_v55 = vld [vmem:[%s1697_s6 + $0xe8] sm:$0xff]  ;;  %791 = vmatpush.msra.mxu1 %v754_v54 }
  0xbd   : > { %814 = vmatpush.msra.mxu2 %v770_v55  ;;  %v742_v54 = vld [vmem:[%s1697_s6 + $0x8] sm:$0xff] }
  0xbe   : > { %v432_v57 = vpop.f32.mrf.mxu2  ;;  %v758_v55 = vld [vmem:[%s1697_s6 + $0x88] sm:$0xff] }
  0xbf   : > { %v433_v58 = vadd.f32 %v432_v57, %v410_v56  ;;  %v785_v56 = vld [vmem:[%s1697_s6 + $0x160] sm:$0xff] }
  0xc0   : > { %v753_v57 = vld [vmem:[%s1697_s6 + $0x60] sm:$0xff] }
  0xc1   : > { %vm438_vm0 = vcmp.gt.f32.partialorder %v433_v58, 0.0  ;;  %v440_v59 = vmul.f32 0.2, %v433_v58  ;;  %v389_v61 = vpop.f32.mrf.mxu0  ;;  %792 = vmatpush.msra.mxu1 %v753_v57  ;;  %v757_v57 = vld [vmem:[%s1697_s6 + $0x80] sm:$0xff] }
  0xc2   : > { %v412_v60 = vpop.f32.mrf.mxu1 }
  0xc3   : > { %v442_v62 = vsel %vm438_vm0, %v433_v58, %v440_v59  ;;  %v413_v63 = vadd.f32 %v412_v60, %v389_v61  ;;  %v769_v58 = vld [vmem:[%s1697_s6 + $0xe0] sm:$0xff]  ;;  %v784_v60 = vld [vmem:[%s1697_s6 + $0x158] sm:$0xff] }
  0xc4   : > { %454 = vrot.lane.b32.xlu1 %v442_v62, %s1205_s17  ;;  %446 = vrot.lane.b32.xlu0 %v442_v62, %s1206_s18 }
  0xc5   : > { %815 = vmatpush.msra.mxu2 %v769_v58 }
  0xc6   : > { %v435_v0 = vpop.f32.mrf.mxu2 }
  0xc7   : > { %v436_v1 = vadd.f32 %v435_v0, %v413_v63  ;;  %v768_v63 = vld [vmem:[%s1697_s6 + $0xd8] sm:$0xff]  ;;  %v783_v0 = vld [vmem:[%s1697_s6 + $0x150] sm:$0xff] }
  0xc8   : > { %816 = vmatpush.msra.mxu2 %v768_v63 }
  0xc9   : > { %vm439_vm1 = vcmp.gt.f32.partialorder %v436_v1, 0.0  ;;  %v441_v2 = vmul.f32 0.2, %v436_v1 }
  0xcb   : > { %v443_v3 = vsel %vm439_vm1, %v436_v1, %v441_v2  ;;  %v751_v2 = vld [vmem:[%s1697_s6 + $0x50] sm:$0xff] }
  0xcc   : > { %456 = vrot.lane.b32.xlu1 %v443_v3, %s1205_s17  ;;  %448 = vrot.lane.b32.xlu0 %v443_v3, %s1206_s18  ;;  %s873_s18 = sshll.u32 %s306_s16, 4  ;;  %s874_s18 = int_to_ptr.vmem [resolvable:$true] %s873_s18 }
 0x136   : > { %v455_v5 = vpop.permute.xlu1 %454  ;;  %v447_v6 = vpop.permute.xlu0 %446 }
 0x137   : > { %v452_v7 = vmax.f32 %v442_v62, %v447_v6 }
 0x139   : > { %v460_v8 = vmax.f32 %v452_v7, %v455_v5  ;;  %v782_v5 = vld [vmem:[%s1697_s6 + $0x148] sm:$0xff] }
 0x13b   : > { %464 = vrot.lane.b32.xlu2 %v460_v8, %s1205_s17 }
 0x13e   : > { %v449_v9 = vpop.permute.xlu0 %448  ;;  %v457_v11 = vpop.permute.xlu1 %456 }
 0x13f   : > { %v453_v10 = vmax.f32 %v443_v3, %v449_v9  ;;  %v766_v9 = vld [vmem:[%s1697_s6 + $0xc8] sm:$0xff] }
 0x141   : > { %v461_v12 = vmax.f32 %v453_v10, %v457_v11  ;;  %v781_v10 = vld [vmem:[%s1697_s6 + $0x140] sm:$0xff] }
 0x143   : > { %466 = vrot.lane.b32.xlu2 %v461_v12, %s1205_s17  ;;  %s872_s17 = scalar_lea.hbm %s1698_s7, %s992_s13 }
 0x144   : > { %s875_s19 = sshll.u32 %s872_s17, 4  ;;  %s876_s19 = int_to_ptr.hbm [resolvable:$true] %s875_s19 }
 0x145   : > { %s1143_s22 = sshra.s32 %s876_s19, 4  ;;  %s1144_s22 = int_to_ptr.hbm [resolvable:$true] %s1143_s22 }
 0x146   : > { %s1145_s23 = scalar_lea.hbm %s1144_s22, 16  ;;  %p1150_p3 = scmp.lt.s32.totalorder %s1144_s22, %s1698_s7 }
 0x147   : > { %p1146_p0 = scmp.ne.s32.totalorder %s1144_s22, %s1145_s23  ;;  %p1151_p4 = scmp.lt.s32.totalorder %s1149_s8, %s1145_s23 }
 0x149   : > { %p1147_p1 = pnand %p1146_p0, %p1287_p5  ;;  %p1152_p7 = por %p1151_p4, %p1150_p3 }
 0x14b   : > { %p1148_p2 = pneg %p1147_p1 }
 0x14d   : > { %p1153_p8 = pnand %p1152_p7, %p1148_p2 }
 0x195   : > { %v465_v13 = vpop.permute.xlu2 %464 }
 0x196   : > { %v471_v14 = vsel %vm470_vm2, %v460_v8, %v465_v13  ;;  %v750_v8 = vld [vmem:[%s1697_s6 + $0x48] sm:$0xff]  ;;  %v749_v13 = vld [vmem:[%s1697_s6 + $0x40] sm:$0xff] }
 0x197   : > { %971 = vmatmul.msk.f32.vlgmr.msrb.gmra.mxu0 %vm474_vm3, %v471_v14  ;;  %v765_v14 = vld [vmem:[%s1697_s6 + $0xc0] sm:$0xff] }
 0x198   : > { %721 = vmatpush.msrb.mxu0 %v653_v39 }
 0x19d   : > { %v467_v15 = vpop.permute.xlu2 %466 }
 0x19e   : > { %v472_v16 = vsel %vm470_vm2, %v461_v12, %v467_v15 }
 0x19f   : > { %972 = vmatmul.msk.f32.vlgmr.msra.gmra.mxu3 %vm474_vm3, %v472_v16 }
 0x1a0   : > { %595 = vmatpush.msra.mxu3 %v579_v26  ;;  %v746_v26 = vld [vmem:[%s1697_s6 + $0x28] sm:$0xff] }
 0x1a2   : > { %596 = vmatpush.msra.mxu3 %v576_v27  ;;  %v762_v27 = vld [vmem:[%s1697_s6 + $0xa8] sm:$0xff] }
 0x1a4   : > { %597 = vmatpush.msra.mxu3 %v573_v28 }
 0x214   : > { %v498_v29 = vpop.f32.mrf.mxu0 }
 0x215   : > { %v504_v30 = vsub.f32 %v442_v62, %v498_v29  ;;  %v752_v62 = vld [vmem:[%s1697_s6 + $0x58] sm:$0xff]  ;;  %v777_v29 = vld [vmem:[%s1697_s6 + $0x120] sm:$0xff] }
 0x216   : > { %793 = vmatpush.msra.mxu1 %v752_v62 }
 0x217   : > { %v506_v31 = vmul.f32 1.442695, %v504_v30 }
 0x218   : > { %794 = vmatpush.msra.mxu1 %v751_v2 }
 0x219   : > { %1061 = vpow2.f32 %v506_v31  ;;  %v776_v31 = vld [vmem:[%s1697_s6 + $0x118] sm:$0xff] }
 0x21a   : > { %795 = vmatpush.msra.mxu1 %v750_v8 }
 0x21c   : > { %796 = vmatpush.msra.mxu1 %v749_v13 }
 0x21e   : > { %797 = vmatpush.msra.mxu1 %v748_v19 }
 0x21f   : > { %v1062_v32 = vpop.eup %1061 }
 0x220   : > { %973 = vmatmul.msk.f32.vlgmr.msrb.gmra.mxu3 %vm513_vm4, %v1062_v32  ;;  %977 = vmatmul.msk.f32.vlgmr.msra.gmra.mxu0 %vm513_vm4, %v1062_v32 }
 0x221   : > { %979 = vmatmul.msk.f32.vlgmr.msrb.gmra.mxu1 %vm513_vm4, %v1062_v32  ;;  %698 = vmatpush.msrb.mxu3 %v652_v37 }
 0x222   : > { %v501_v33 = vpop.f32.mrf.mxu3  ;;  %798 = vmatpush.msra.mxu1 %v747_v22 }
 0x223   : > { %v505_v34 = vsub.f32 %v443_v3, %v501_v33  ;;  %v767_v3 = vld [vmem:[%s1697_s6 + $0xd0] sm:$0xff] }
 0x224   : > { %817 = vmatpush.msra.mxu2 %v767_v3  ;;  %799 = vmatpush.msra.mxu1 %v746_v26 }
 0x225   : > { %v508_v35 = vmul.f32 1.442695, %v505_v34 }
 0x226   : > { %818 = vmatpush.msra.mxu2 %v766_v9 }
 0x227   : > { %1063 = vpow2.f32 %v508_v35  ;;  %v775_v35 = vld [vmem:[%s1697_s6 + $0x110] sm:$0xff] }
 0x228   : > { %819 = vmatpush.msra.mxu2 %v765_v14 }
 0x22a   : > { %820 = vmatpush.msra.mxu2 %v764_v20 }
 0x22c   : > { %821 = vmatpush.msra.mxu2 %v763_v23 }
 0x22d   : > { %v1064_v36 = vpop.eup %1063 }
 0x22e   : > { %974 = vmatmul.msk.f32.gmra.mxu3 %vm513_vm4, %v1064_v36  ;;  %978 = vmatmul.msk.f32.gmra.mxu0 %vm513_vm4, %v1064_v36 }
 0x22f   : > { %980 = vmatmul.msk.f32.gmra.mxu1 %vm513_vm4, %v1064_v36  ;;  %822 = vmatpush.msra.mxu2 %v762_v27 }
 0x236   : > { %975 = vmatmul.msk.f32.vlgmr.msra.gmra.mxu3 %vm513_vm4, %v1062_v32 }
 0x237   : > { %835 = vmatpush.msra.mxu3 %v788_v41  ;;  %v761_v41 = vld [vmem:[%s1697_s6 + $0xa0] sm:$0xff] }
 0x238   : > { %823 = vmatpush.msra.mxu2 %v761_v41 }
 0x239   : > { %836 = vmatpush.msra.mxu3 %v787_v42  ;;  %v774_v42 = vld [vmem:[%s1697_s6 + $0x108] sm:$0xff] }
 0x23a   : > { %824 = vmatpush.msra.mxu2 %v760_v44 }
 0x23b   : > { %837 = vmatpush.msra.mxu3 %v786_v45  ;;  %v773_v45 = vld [vmem:[%s1697_s6 + $0x100] sm:$0xff] }
 0x23c   : > { %825 = vmatpush.msra.mxu2 %v759_v48 }
 0x23d   : > { %838 = vmatpush.msra.mxu3 %v785_v56  ;;  %v741_v56 = vld [vmem:[%s1697_s6] sm:$0xff] }
 0x23e   : > { %976 = vmatmul.msk.f32.gmra.mxu3 %vm513_vm4, %v1064_v36  ;;  %826 = vmatpush.msra.mxu2 %v758_v55 }
 0x23f   : > { %839 = vmatpush.msra.mxu3 %v784_v60 }
 0x240   : > { %827 = vmatpush.msra.mxu2 %v757_v57 }
 0x241   : > { %840 = vmatpush.msra.mxu3 %v783_v0 }
 0x243   : > { %841 = vmatpush.msra.mxu3 %v782_v5 }
 0x245   : > { %842 = vmatpush.msra.mxu3 %v781_v10 }
 0x247   : > { %843 = vmatpush.msra.mxu3 %v780_v17 }
 0x249   : > { %844 = vmatpush.msra.mxu3 %v779_v21 }
 0x24b   : > { %845 = vmatpush.msra.mxu3 %v778_v24 }
 0x24d   : > { %846 = vmatpush.msra.mxu3 %v777_v29 }
 0x24f   : > { %847 = vmatpush.msra.mxu3 %v776_v31 }
 0x251   : > { %848 = vmatpush.msra.mxu3 %v775_v35 }
 0x253   : > { %849 = vmatpush.msra.mxu3 %v774_v42 }
 0x255   : > { %850 = vmatpush.msra.mxu3 %v773_v45 }
 0x29d   : > { %v622_v58 = vpop.f32.mrf.mxu0 }
 0x29e   : > { %v730_v2 = vmul.f32 %v622_v58, %v1474_v50 }
 0x2a3   : > { %v537_v40 = vpop.f32.mrf.mxu3 }
 0x2a4   : > { %1065 = vrcp.f32 %v537_v40  ;;  %v554_v4 = vand.u32 2147483648, %v537_v40  ;;  %v552_v7 = vand.u32 2147483647, %v537_v40  ;;  %vm548_vm6 = vweird.f32 %v537_v40 }
 0x2a6   : > { %v555_v15 = vor.u32 1.1754944e-38, %v554_v4  ;;  %vm553_vm8 = vcmp.eq.f32.partialorder %v552_v7, 8.507059e+37 }
 0x2aa   : > { %v1066_v59 = vpop.eup %1065 }
 0x2ab   : > { %v544_v61 = vmul.f32 %v1066_v59, %v537_v40  ;;  %vm549_vm5 = vweird.f32 %v1066_v59  ;;  %v745_v40 = vld [vmem:[%s1697_s6 + $0x20] sm:$0xff]  ;;  %v625_v60 = vpop.f32.mrf.mxu0 }
 0x2ac   : > { %vm550_vm7 = vmor %vm548_vm6, %vm549_vm5  ;;  %800 = vmatpush.msra.mxu1 %v745_v40 }
 0x2ad   : > { %v545_v1 = vsub.f32 1.0, %v544_v61  ;;  %v645_v61 = vpop.f32.mrf.mxu1 }
 0x2ae   : > { %801 = vmatpush.msra.mxu1 %v744_v43  ;;  %v731_v63 = vmul.f32 %v645_v61, %v1467_v47  ;;  %v733_v47 = vmul.f32 %v625_v60, %v1483_v53 }
 0x2af   : > { %v546_v6 = vmul.f32 %v1066_v59, %v545_v1 }
 0x2b0   : > { %802 = vmatpush.msra.mxu1 %v743_v46 }
 0x2b1   : > { %v540_v11 = vpop.f32.mrf.mxu3  ;;  %v547_v12 = vadd.f32 %v1066_v59, %v546_v6 }
 0x2b2   : > { %1067 = vrcp.f32 %v540_v11  ;;  %v569_v32 = vand.u32 2147483648, %v540_v11  ;;  %v567_v34 = vand.u32 2147483647, %v540_v11  ;;  %vm563_vm10 = vweird.f32 %v540_v11  ;;  %803 = vmatpush.msra.mxu1 %v742_v54 }
 0x2b3   : > { %v551_v16 = vsel %vm550_vm7, %v1066_v59, %v547_v12 }
 0x2b4   : > { %v556_v18 = vsel %vm553_vm8, %v555_v15, %v551_v16  ;;  %v570_v37 = vor.u32 1.1754944e-38, %v569_v32  ;;  %vm568_vm12 = vcmp.eq.f32.partialorder %v567_v34, 8.507059e+37  ;;  %804 = vmatpush.msra.mxu1 %v741_v56 }
 0x2b5   : > { %981 = vmatmul.msk.f32.vlgmr.msrb.gmra.mxu2 %vm474_vm3, %v556_v18  ;;  %983 = vmatmul.msk.f32.vlgmr.msrb.gmra.mxu3 %vm474_vm3, %v556_v18  ;;  %v648_v8 = vpop.f32.mrf.mxu1 }
 0x2b6   : > { %985 = vmatmul.msk.f32.vlgmr.msrb.gmra.mxu0 %vm474_vm3, %v556_v18  ;;  %v734_v9 = vmul.f32 %v648_v8, %v1479_v51 }
 0x2b8   : > { %v1068_v25 = vpop.eup %1067 }
 0x2b9   : > { %v559_v28 = vmul.f32 %v1068_v25, %v540_v11  ;;  %vm564_vm9 = vweird.f32 %v1068_v25  ;;  %v599_v59 = vpop.f32.mrf.mxu3 }
 0x2ba   : > { %vm565_vm11 = vmor %vm563_vm10, %vm564_vm9  ;;  %v729_v3 = vmul.f32 %v599_v59, %v1472_v49 }
 0x2bb   : > { %v560_v30 = vsub.f32 1.0, %v559_v28 }
 0x2bd   : > { %v561_v33 = vmul.f32 %v1068_v25, %v560_v30 }
 0x2bf   : > { %v562_v36 = vadd.f32 %v1068_v25, %v561_v33 }
 0x2c1   : > { %v566_v38 = vsel %vm565_vm11, %v1068_v25, %v562_v36  ;;  %v602_v62 = vpop.f32.mrf.mxu3 }
 0x2c2   : > { %v571_v39 = vsel %vm568_vm12, %v570_v37, %v566_v38  ;;  %v732_v12 = vmul.f32 %v602_v62, %v1481_v52 }
 0x2c3   : > { %982 = vmatmul.msk.f32.gmra.mxu2 %vm474_vm3, %v571_v39  ;;  %984 = vmatmul.msk.f32.gmra.mxu3 %vm474_vm3, %v571_v39 }
 0x2c4   : > { %986 = vmatmul.msk.f32.gmra.mxu0 %vm474_vm3, %v571_v39 }
 0x333   : > { %v723_v0 = vpop.f32.mrf.mxu0 }
 0x334   : > { %v737_v1 = vmul.f32 %v731_v63, %v723_v0 }
 0x336   : > { %851 = vmatmul.f32.vlgmr.msra.gmra.mxu3 %v737_v1 }
 0x338   : > { %v677_v4 = vpop.f32.mrf.mxu2  ;;  %v700_v5 = vpop.f32.mrf.mxu3 }
 0x339   : > { %v735_v6 = vmul.f32 %v729_v3, %v677_v4  ;;  %v736_v7 = vmul.f32 %v730_v2, %v700_v5 }
 0x33b   : > { %805 = vmatmul.f32.vlgmr.msra.gmra.mxu1 %v735_v6  ;;  %828 = vmatmul.f32.vlgmr.msra.gmra.mxu2 %v736_v7 }
 0x341   : > { %v726_v10 = vpop.f32.mrf.mxu0 }
 0x342   : > { %v740_v11 = vmul.f32 %v734_v9, %v726_v10 }
 0x344   : > { %854 = vmatmul.f32.gmra.mxu3 %v740_v11 }
 0x346   : > { %v680_v50 = vpop.f32.mrf.mxu2  ;;  %v703_v49 = vpop.f32.mrf.mxu3 }
 0x347   : > { %v738_v13 = vmul.f32 %v732_v12, %v680_v50  ;;  %v739_v14 = vmul.f32 %v733_v47, %v703_v49 }
 0x349   : > { %808 = vmatmul.f32.gmra.mxu1 %v738_v13  ;;  %831 = vmatmul.f32.gmra.mxu2 %v739_v14 }
 0x3b8   : > { %v806_v15 = vpop.f32.mrf.mxu1 }
 0x3b9   : > { %v852_v51 = vpop.f32.mrf.mxu3 }
 0x3be   : > { %v829_v16 = vpop.f32.mrf.mxu2 }
 0x3bf   : > { %v830_v17 = vadd.f32 %v829_v16, %v806_v15 }
 0x3c1   : > { %v853_v18 = vadd.f32 %v852_v51, %v830_v17 }
 0x3c3   : > { %858 = vst [vmem:[%s306_s16] sm:$0xff] %v853_v18 }
 0x3c6   : > { %v809_v52 = vpop.f32.mrf.mxu1 }
 0x3c7   : > { %v855_v20 = vpop.f32.mrf.mxu3 }
 0x3cc   : > { %v832_v53 = vpop.f32.mrf.mxu2 }
 0x3cd   : > { %v833_v19 = vadd.f32 %v832_v53, %v809_v52 }
 0x3cf   : > { %v856_v21 = vadd.f32 %v855_v20, %v833_v19 }
 0x3d1   : > { %859 = vst [vmem:[%s306_s16 + $0x8] sm:$0xff] %v856_v21 }
 0x3d2   : > { %1156 = shalt.err (!%p1153_p8)
}
 0x3d3   : > { %s1207_s14 = smov 128   ;;  %s1208_s16 = smov 8  }
 0x3d4   : > { %1003 = dma.vmem_to_hbm [thread:$0]  (%p1287_p5), %s874_s18, 256, %s876_s19, %s861_s20, %s1207_s14, %s1207_s14, %s1208_s16  }
 0x3d5 PF: > { %p1020_p9 = scmp.ge.s32.totalorder %s1199_s27, 2  ;;  %s890_s21 = sand.u32 1, %s1187_s24  }
 0x3d6   : > { %s891_s9 = scalar_lea.sflag [#allocation4], %s890_s21 }
 0x3d7   : > { %p1013_p10 = pnand %p1020_p9, %p1291_p6 }
 0x3d9   : > { %p1014_p11 = pneg %p1013_p10 }
 0x3db   : > { %1182 = dma.done.wait (%p1014_p11), %s891_s9, 256  }
 0x3dc   : > { %1184 = vsyncadd (%p1014_p11), %s891_s9, 4294967040  ;;  %p19_p12 = scmp.ge.s32.totalorder %s1274_s30, 4   ;;  %s1702_s24 = smov %s1191_s25 }
 0x3dd   : > { %s1703_s25 = smov %s1195_s26  ;;  %s1704_s26 = smov %s1285_s10 }
 0x3de   : > { %s1705_s27 = smov %s1274_s30  ;;  %21 = sbr.rel (!%p19_p12) target bundleno = 5 (0x5), region = 92 }
 0x3e3   :  { %897 = vsyncpa [#allocation3], 1 }
 0x3e4   :  { %899 = vsyncpa [#allocation3 + $0x1], 1 }
 0x3e5   :  { %900 = vsyncpa [#allocation6], 1 }
 0x3e6   :  { %901 = vsyncpa [#allocation4], 1 }
 0x3e7   :  { %903 = vsyncpa [#allocation4 + $0x1], 1 }

</bundles_post_ra>
